<compile_context>
chip_gen: v5e
topology: v5e:2x2
jax: 0.10.0
libtpu: 0.0.40
codegen_flags: <defaults>
</compile_context>

<pallas_src>
import functools

import jax
import jax.numpy as jnp
from jax.experimental import pallas as pl
from jax.experimental.pallas import tpu as pltpu

IN_DIM = 2      # state dimension of the spiral ODE
OUT_DIM = 2
HID = 50        # logical hidden width (matches the PyTorch module)
HID_PAD = 56    # padded hidden width (multiple of 8 sublanes; 7 vregs/lane-tile)
LANE = 128      # batch is padded to the 128-lane vreg width


# ---------------------------------------------------------------------------
# Core math, features-major: y [IN_DIM, B] -> out [OUT_DIM, B].
# Runs entirely on VPU + XLU + EUP; no degenerate K=2 / N=2 MXU matmuls.
# (Used by the single-eval reference kernel; the RK4 kernel inlines its own
# copy so the weight broadcasts can be hoisted out of the step loop.)
# ---------------------------------------------------------------------------
def _mlp(y, w1, b1, w2t, b2):
    y3 = y * y * y                                               # y ** 3 (VPU)
    h = w1[:, 0:1] * y3[0:1, :] + w1[:, 1:2] * y3[1:2, :] + b1   # K=2: 2 FMAs
    h = h - jnp.tanh(h)                                          # Tanhshrink
    o0 = jnp.sum(h * w2t[:, 0:1], axis=0, keepdims=True)         # N=2: XLU sums
    o1 = jnp.sum(h * w2t[:, 1:2], axis=0, keepdims=True)
    return jnp.concatenate([o0, o1], axis=0) + b2                 # [2, B]


# ---------------------------------------------------------------------------
# Kernel 1: single forward evaluation (correctness reference ONLY — at these
# sizes a standalone call is pure launch/DMA overhead; use odeint_rk4 for any
# repeated evaluation).
# ---------------------------------------------------------------------------
def _odefunc_kernel(y_ref, w1_ref, b1_ref, w2t_ref, b2_ref, o_ref):
    out = _mlp(y_ref[...], w1_ref[...], b1_ref[...], w2t_ref[...], b2_ref[...])
    o_ref[...] = out.astype(o_ref.dtype)


def odefunc_forward(t, y, w1, b1, w2t, b2):
    """Pallas equivalent of ODEFunc.forward(t, y). `t` is unused (as in PyTorch)."""
    del t
    batch, in_dim = y.shape
    assert in_dim == IN_DIM
    b_pad = ((batch + LANE - 1) // LANE) * LANE

    # Layout plumbing (outside the kernel): features-major, batch on lanes.
    yt = jnp.zeros((IN_DIM, b_pad), y.dtype).at[:, :batch].set(y.T)

    full = lambda shape: pl.BlockSpec(shape, lambda: (0,) * len(shape))
    out = pl.pallas_call(
        _odefunc_kernel,
        grid=(),
        out_shape=jax.ShapeDtypeStruct((OUT_DIM, b_pad), y.dtype),
        in_specs=[
            full((IN_DIM, b_pad)),      # y (features-major, lane-dense batch)
            full((HID_PAD, IN_DIM)),    # W1  [hid, in]   (PyTorch-native, padded)
            full((HID_PAD, 1)),         # b1  [hid, 1]
            full((HID_PAD, OUT_DIM)),   # W2^T [hid, out] (padded)
            full((OUT_DIM, 1)),         # b2  [out, 1]
        ],
        out_specs=full((OUT_DIM, b_pad)),
    )(yt, w1, b1, w2t, b2)
    return out[:, :batch].T             # back to [batch, OUT_DIM]


# ---------------------------------------------------------------------------
# Kernel 2: fused RK4 solver.
# grid = (batch_tiles, n_steps // CHUNK); weights have constant index_maps so
# they stay resident in VMEM, the f32 state is carried in a VMEM scratch, and
# each grid iteration runs CHUNK statically-unrolled RK4 steps, writing two
# sublane-dense (CHUNK, b_tile) trajectory blocks.
# ---------------------------------------------------------------------------
def _rk4_kernel(y0_ref, w1_ref, b1_ref, w2t_ref, b2_ref,
                traj0_ref, traj1_ref, y_scr, *, dt, chunk):
    @pl.when(pl.program_id(1) == 0)
    def _():
        # f32 scratch is the source of truth for the carried state.
        y_scr[...] = y0_ref[...].astype(jnp.float32)

    b = y_scr.shape[1]

    # Hoist weight/bias lane-broadcasts ONCE per chunk (JAX does not CSE
    # broadcast_in_dim; re-emitting them per RK4 stage was pure VPU filler).
    w1a = jnp.broadcast_to(w1_ref[:, 0:1], (HID_PAD, b))
    w1b = jnp.broadcast_to(w1_ref[:, 1:2], (HID_PAD, b))
    b1b = jnp.broadcast_to(b1_ref[...], (HID_PAD, b))
    w2a = jnp.broadcast_to(w2t_ref[:, 0:1], (HID_PAD, b))
    w2b = jnp.broadcast_to(w2t_ref[:, 1:2], (HID_PAD, b))
    b2b = jnp.broadcast_to(b2_ref[...], (OUT_DIM, b))

    def f(y):                                           # ODEFunc(t, y), f32
        y3 = y * y * y
        h = w1a * y3[0:1, :] + w1b * y3[1:2, :] + b1b   # Linear(2, 50)
        h = h - jnp.tanh(h)                             # Tanhshrink (VPU+EUP)
        o0 = jnp.sum(h * w2a, axis=0, keepdims=True)    # Linear(50, 2) via XLU
        o1 = jnp.sum(h * w2b, axis=0, keepdims=True)
        return jnp.concatenate([o0, o1], axis=0) + b2b

    y = y_scr[...]
    # Static unroll: all trajectory stores have static row indices, and the
    # per-grid-step pipeline overhead is amortized over `chunk` RK4 steps.
    for j in range(chunk):
        k1 = f(y)
        k2 = f(y + (0.5 * dt) * k1)
        k3 = f(y + (0.5 * dt) * k2)
        k4 = f(y + dt * k3)
        y = y + (dt / 6.0) * (k1 + 2.0 * k2 + 2.0 * k3 + k4)
        traj0_ref[j:j + 1, :] = y[0:1, :].astype(traj0_ref.dtype)
        traj1_ref[j:j + 1, :] = y[1:2, :].astype(traj1_ref.dtype)

    y_scr[...] = y


def odeint_rk4(y0, w1, b1, w2t, b2, *, dt, n_steps, chunk=16):
    """Integrate dy/dt = ODEFunc(t, y) with fixed-step RK4, fully fused in-kernel.

    Returns the trajectory y_1..y_n as [n_steps, batch, 2]."""
    batch, in_dim = y0.shape
    assert in_dim == IN_DIM
    assert chunk % 8 == 0, "chunk must be a multiple of 8 (sublane-dense output)"

    b_pad = ((batch + LANE - 1) // LANE) * LANE
    # Batch tiling: with >=2 tiles the 'parallel' axis shards across the two
    # TensorCores on v7x; harmless on v5e/v6e.
    b_tile = 256 if b_pad % 256 == 0 else LANE
    n_btiles = b_pad // b_tile

    n_chunks = pl.cdiv(n_steps, chunk)
    steps_pad = n_chunks * chunk

    y0t = jnp.zeros((IN_DIM, b_pad), y0.dtype).at[:, :batch].set(y0.T)

    const = lambda shape: pl.BlockSpec(shape, lambda bt, c: (0, 0))
    traj_spec = pl.BlockSpec((chunk, b_tile), lambda bt, c: (c, bt))

    traj0, traj1 = pl.pallas_call(
        functools.partial(_rk4_kernel, dt=float(dt), chunk=chunk),
        grid=(n_btiles, n_chunks),
        out_shape=(jax.ShapeDtypeStruct((steps_pad, b_pad), y0.dtype),
                   jax.ShapeDtypeStruct((steps_pad, b_pad), y0.dtype)),
        in_specs=[
            pl.BlockSpec((IN_DIM, b_tile), lambda bt, c: (0, bt)),  # y0 tile
            const((HID_PAD, IN_DIM)),    # W1 (resident in VMEM across steps)
            const((HID_PAD, 1)),         # b1
            const((HID_PAD, OUT_DIM)),   # W2^T
            const((OUT_DIM, 1)),         # b2
        ],
        out_specs=(traj_spec, traj_spec),
        scratch_shapes=[pltpu.VMEM((IN_DIM, b_tile), jnp.float32)],
        compiler_params=pltpu.CompilerParams(
            dimension_semantics=("parallel", "arbitrary")),
    )(y0t, w1, b1, w2t, b2)

    # [n_steps, batch, 2] (drop step/batch padding, stack the two components).
    return jnp.stack([traj0[:n_steps, :batch], traj1[:n_steps, :batch]], axis=-1)


# ---------------------------------------------------------------------------
# Parameters: nn.init.normal_(weight, std=0.1); bias = 0.  Stored padded,
# features-major (PyTorch-native orientation for W1, transposed W2).
# ---------------------------------------------------------------------------
def init_params(key, dtype=jnp.float32):
    k1, k2 = jax.random.split(key)
    w1 = 0.1 * jax.random.normal(k1, (HID, IN_DIM))      # PyTorch Linear(2,50).weight
    w2 = 0.1 * jax.random.normal(k2, (OUT_DIM, HID))     # PyTorch Linear(50,2).weight
    w1p = jnp.zeros((HID_PAD, IN_DIM), dtype).at[:HID, :].set(w1.astype(dtype))
    b1p = jnp.zeros((HID_PAD, 1), dtype)
    w2tp = jnp.zeros((HID_PAD, OUT_DIM), dtype).at[:HID, :].set(w2.T.astype(dtype))
    b2p = jnp.zeros((OUT_DIM, 1), dtype)
    return w1p, b1p, w2tp, b2p


if __name__ == "__main__":
    key = jax.random.PRNGKey(0)
    kp, ky = jax.random.split(key)

    w1, b1, w2t, b2 = init_params(kp)

    batch = 8
    y = jax.random.normal(ky, (batch, IN_DIM), jnp.float32)   # spiral state [batch, 2]
    t = jnp.float32(0.0)                                       # unused, matches signature

    # --- Pure-JAX reference (unpadded math) --------------------------------
    w1u, b1u = w1[:HID, :], b1[:HID, 0]
    w2u, b2u = w2t[:HID, :], b2[:, 0]

    def ref_f(yy):
        h = (yy ** 3) @ w1u.T + b1u
        h = h - jnp.tanh(h)
        return h @ w2u + b2u

    # --- 1) single forward evaluation (module semantics check) --------------
    out = jax.block_until_ready(odefunc_forward(t, y, w1, b1, w2t, b2))
    ref = ref_f(y)
    assert out.shape == (batch, OUT_DIM)
    assert jnp.allclose(out, ref, atol=1e-4, rtol=1e-4)

    # --- 2) fused, chunked RK4 solve ----------------------------------------
    dt, n_steps, chunk = 0.05, 64, 16
    traj = jax.block_until_ready(
        odeint_rk4(y, w1, b1, w2t, b2, dt=dt, n_steps=n_steps, chunk=chunk))

    yr = y
    ref_traj = []
    for _ in range(n_steps):
        k1 = ref_f(yr)
        k2 = ref_f(yr + 0.5 * dt * k1)
        k3 = ref_f(yr + 0.5 * dt * k2)
        k4 = ref_f(yr + dt * k3)
        yr = yr + (dt / 6.0) * (k1 + 2.0 * k2 + 2.0 * k3 + k4)
        ref_traj.append(yr)
    ref_traj = jnp.stack(ref_traj)

    assert traj.shape == (n_steps, batch, OUT_DIM)
    assert jnp.allclose(traj, ref_traj, atol=1e-4, rtol=1e-4)

    print("KERNEL_OK")
</pallas_src>

<mosaic_0001>
module attributes {stable_mosaic.version = 11 : i64} {
  func.func @_odefunc_kernel(%arg0: memref<2x128xf32, #tpu.memory_space<vmem>>, %arg1: memref<56x2xf32, #tpu.memory_space<vmem>>, %arg2: memref<56x1xf32, #tpu.memory_space<vmem>>, %arg3: memref<56x2xf32, #tpu.memory_space<vmem>>, %arg4: memref<2x1xf32, #tpu.memory_space<vmem>>, %arg5: memref<2x128xf32, #tpu.memory_space<vmem>>) attributes {dimension_semantics = [], scalar_prefetch = 0 : i64, scratch_operands = 0 : i64, tpu.core_type = #tpu.core_type<tc>} {
    %c0 = arith.constant 0 : index
    %c0_0 = arith.constant 0 : index
    %0 = vector.load %arg0[%c0, %c0_0] : memref<2x128xf32, #tpu.memory_space<vmem>>, vector<2x128xf32>
    %c0_1 = arith.constant 0 : index
    %c0_2 = arith.constant 0 : index
    %1 = vector.load %arg1[%c0_1, %c0_2] : memref<56x2xf32, #tpu.memory_space<vmem>>, vector<56x2xf32>
    %c0_3 = arith.constant 0 : index
    %c0_4 = arith.constant 0 : index
    %2 = vector.load %arg2[%c0_3, %c0_4] : memref<56x1xf32, #tpu.memory_space<vmem>>, vector<56x1xf32>
    %c0_5 = arith.constant 0 : index
    %c0_6 = arith.constant 0 : index
    %3 = vector.load %arg3[%c0_5, %c0_6] : memref<56x2xf32, #tpu.memory_space<vmem>>, vector<56x2xf32>
    %c0_7 = arith.constant 0 : index
    %c0_8 = arith.constant 0 : index
    %4 = vector.load %arg4[%c0_7, %c0_8] : memref<2x1xf32, #tpu.memory_space<vmem>>, vector<2x1xf32>
    %5 = arith.mulf %0, %0 : vector<2x128xf32>
    %6 = arith.mulf %5, %0 : vector<2x128xf32>
    %7 = vector.extract_strided_slice %1 {offsets = [0, 0], sizes = [56, 1], strides = [1, 1]} : vector<56x2xf32> to vector<56x1xf32>
    %8 = vector.extract_strided_slice %6 {offsets = [0, 0], sizes = [1, 128], strides = [1, 1]} : vector<2x128xf32> to vector<1x128xf32>
    %9 = vector.broadcast %7 : vector<56x1xf32> to vector<56x128xf32>
    %10 = vector.broadcast %8 : vector<1x128xf32> to vector<56x128xf32>
    %11 = arith.mulf %9, %10 : vector<56x128xf32>
    %12 = vector.extract_strided_slice %1 {offsets = [0, 1], sizes = [56, 1], strides = [1, 1]} : vector<56x2xf32> to vector<56x1xf32>
    %13 = vector.extract_strided_slice %6 {offsets = [1, 0], sizes = [1, 128], strides = [1, 1]} : vector<2x128xf32> to vector<1x128xf32>
    %14 = vector.broadcast %12 : vector<56x1xf32> to vector<56x128xf32>
    %15 = vector.broadcast %13 : vector<1x128xf32> to vector<56x128xf32>
    %16 = arith.mulf %14, %15 : vector<56x128xf32>
    %17 = arith.addf %11, %16 : vector<56x128xf32>
    %18 = vector.broadcast %2 : vector<56x1xf32> to vector<56x128xf32>
    %19 = arith.addf %17, %18 : vector<56x128xf32>
    %20 = math.tanh %19 : vector<56x128xf32>
    %21 = arith.subf %19, %20 : vector<56x128xf32>
    %22 = vector.extract_strided_slice %3 {offsets = [0, 0], sizes = [56, 1], strides = [1, 1]} : vector<56x2xf32> to vector<56x1xf32>
    %23 = vector.broadcast %22 : vector<56x1xf32> to vector<56x128xf32>
    %24 = arith.mulf %21, %23 : vector<56x128xf32>
    %cst = arith.constant dense<0.000000e+00> : vector<128xf32>
    %25 = vector.multi_reduction <add>, %24, %cst [0] : vector<56x128xf32> to vector<128xf32>
    %26 = vector.shape_cast %25 : vector<128xf32> to vector<1x128xf32>
    %27 = vector.extract_strided_slice %3 {offsets = [0, 1], sizes = [56, 1], strides = [1, 1]} : vector<56x2xf32> to vector<56x1xf32>
    %28 = vector.broadcast %27 : vector<56x1xf32> to vector<56x128xf32>
    %29 = arith.mulf %21, %28 : vector<56x128xf32>
    %cst_9 = arith.constant dense<0.000000e+00> : vector<128xf32>
    %30 = vector.multi_reduction <add>, %29, %cst_9 [0] : vector<56x128xf32> to vector<128xf32>
    %31 = vector.shape_cast %30 : vector<128xf32> to vector<1x128xf32>
    %32 = tpu.concatenate %26, %31 in 0 : vector<1x128xf32>, vector<1x128xf32> -> vector<2x128xf32>
    %33 = vector.broadcast %4 : vector<2x1xf32> to vector<2x128xf32>
    %34 = arith.addf %32, %33 : vector<2x128xf32>
    %c0_10 = arith.constant 0 : index
    %c0_11 = arith.constant 0 : index
    %35 = vector.load %arg5[%c0_10, %c0_11] : memref<2x128xf32, #tpu.memory_space<vmem>>, vector<2x128xf32>
    tpu.vector_store %arg5[%c0_10, %c0_11], %34 {strides = array<i32>} : memref<2x128xf32, #tpu.memory_space<vmem>>, vector<2x128xf32>,
    return
  }
}

</mosaic_0001>

<bundles_post_ra>
// kernel: tpu_custom_call.1
= control target key start
LH: loop header
LB: loop body
LE: loop exit
PB: predicated region body
PF: predicated region fallthrough
CT: control target
= control target key end

     0   :  { %v373_v3 = vmov 0   ;;  %s499_s0 = inlined_call_operand.vmem [shape: f32[2,128], index: 0, kind: input, shape index: {}]   ;;  %s500_s1 = inlined_call_operand.vmem [shape: f32[56,2], index: 1, kind: input, shape index: {}]   ;;  %s501_s2 = inlined_call_operand.vmem [shape: f32[56,1], index: 2, kind: input, shape index: {}]   ;;  %s502_s3 = inlined_call_operand.vmem [shape: f32[56,2], index: 3, kind: input, shape index: {}]   ;;  %s503_s4 = inlined_call_operand.vmem [shape: f32[2,1], index: 4, kind: input, shape index: {}]   ;;  %s504_s5 = inlined_call_operand.hbm [shape: f32[2,128], index: 5, kind: output, shape index: {}]  }
   0x1   :  { %v26_v0 = vld [vmem:[%s500_s1 + $0x20] sm:$0xff]  ;;  %v24_v1 = vld [vmem:[%s500_s1 + $0x10] sm:$0xff]  ;;  %319 = vset.pattern.permute.xlu2 %v373_v3  ;;  %318 = vset.pattern.permute.xlu1 %v373_v3 }
   0x2   :  { %v22_v2 = vld [vmem:[%s500_s1] sm:$0xff]  ;;  %317 = vset.pattern.permute.xlu0 %v373_v3  ;;  %68 = vperm.xlu2 %319, %v26_v0  }
   0x3   :  { %58 = vperm.xlu1 %318, %v24_v1   ;;  %48 = vperm.xlu0 %317, %v22_v2  }
   0x4   :  { %10 = vsyncpa [#allocation3], 0  ;;  %v27_v4 = vld [vmem:[%s500_s1 + $0x28] sm:$0xff]  ;;  %v25_v5 = vld [vmem:[%s500_s1 + $0x18] sm:$0xff]  ;;  %v374_v8 = vmov 1   ;;  %vm289_vm0 = vcmask 1040384  }
   0x5   :  { %v23_v6 = vld [vmem:[%s500_s1 + $0x8] sm:$0xff]  ;;  %v28_v7 = vld [vmem:[%s500_s1 + $0x30] sm:$0xff]  ;;  %v29_v9 = vld [vmem:[%s501_s2] sm:$0xff]  ;;  %s305_s12 = sshll.u32 %s504_s5, 4  ;;  %s306_s12 = int_to_ptr.hbm [resolvable:$true] %s305_s12 }
   0x6   :  { %v34_v10 = vld [vmem:[%s501_s2 + $0x28] sm:$0xff]  ;;  %v31_v12 = vld [vmem:[%s501_s2 + $0x10] sm:$0xff]  ;;  %v33_v14 = vld [vmem:[%s501_s2 + $0x20] sm:$0xff] }
   0x7   :  { %v37_v11 = vld [vmem:[%s502_s3 + $0x8] sm:$0xff]  ;;  %v32_v15 = vld [vmem:[%s501_s2 + $0x18] sm:$0xff]  ;;  %v36_v16 = vld [vmem:[%s502_s3] sm:$0xff] }
   0x8   :  { %v30_v13 = vld [vmem:[%s501_s2 + $0x8] sm:$0xff]  ;;  %v35_v17 = vld [vmem:[%s501_s2 + $0x30] sm:$0xff]  ;;  %v40_v18 = vld [vmem:[%s502_s3 + $0x20] sm:$0xff] }
   0x9   :  { %v39_v19 = vld [vmem:[%s502_s3 + $0x18] sm:$0xff]  ;;  %v38_v20 = vld [vmem:[%s502_s3 + $0x10] sm:$0xff]  ;;  %v41_v23 = vld [vmem:[%s502_s3 + $0x28] sm:$0xff] }
   0xa   :  { %73 = vperm.xlu2 %319, %v27_v4   ;;  %v42_v21 = vld [vmem:[%s502_s3 + $0x30] sm:$0xff]  ;;  %v43_v26 = vld [vmem:[%s503_s4] sm:$0x3] }
   0xb   :  { %63 = vperm.xlu1 %318, %v25_v5   ;;  %53 = vperm.xlu0 %317, %v23_v6   ;;  %v21_v38 = vld [vmem:[%s499_s0] sm:$0x3]  ;;  %s375_s0 = smov [#allocation2]  }
   0xc   :  { %v44_v40 = vmul.f32 %v21_v38, %v21_v38  ;;  %s303_s4 = sshll.u32 %s375_s0, 4  ;;  %s304_s4 = int_to_ptr.vmem [resolvable:$true] %s303_s4 }
   0xe   :  { %v45_v43 = vmul.f32 %v44_v40, %v21_v38 }
  0x10   :  { %v81_v44 = vperm.slane %v45_v43, 0  ;;  %v117_v45 = vperm.slane %v45_v43, 1 }
  0x12   :  { %321 = vset.pattern.permute.xlu2 %v374_v8 }
  0x13   :  { %320 = vset.pattern.permute.xlu1 %v374_v8  ;;  %78 = vperm.xlu0 %317, %v28_v7  }
  0x14   :  { %94 = vperm.xlu2 %321, %v23_v6   ;;  %90 = vperm.xlu1 %320, %v22_v2  }
  0x1b   :  { %134 = vperm.xlu0 %317, %v29_v9  }
  0x1c   :  { %106 = vperm.xlu2 %321, %v26_v0   ;;  %102 = vperm.xlu1 %320, %v25_v5  }
  0x23   :  { %159 = vperm.xlu0 %317, %v34_v10  }
  0x24   :  { %114 = vperm.xlu2 %321, %v28_v7   ;;  %110 = vperm.xlu1 %320, %v27_v4  }
  0x2b   :  { %195 = vperm.xlu0 %317, %v37_v11  }
  0x2c   :  { %323 = vset.pattern.permute.xlu2 %v373_v3  ;;  %322 = vset.pattern.permute.xlu1 %v373_v3 }
  0x2d   :  { %144 = vperm.xlu2 %323, %v31_v12   ;;  %139 = vperm.xlu1 %322, %v30_v13  }
  0x33   :  { %324 = vset.pattern.permute.xlu0 %v374_v8 }
  0x34   :  { %98 = vperm.xlu0 %324, %v24_v1  }
  0x35   :  { %154 = vperm.xlu2 %323, %v33_v14   ;;  %149 = vperm.xlu1 %322, %v32_v15  }
  0x3c   :  { %243 = vperm.xlu0 %324, %v36_v16  }
  0x3d   :  { %190 = vperm.xlu2 %323, %v36_v16   ;;  %164 = vperm.xlu1 %322, %v35_v17  }
  0x44   :  { %259 = vperm.xlu0 %324, %v40_v18  }
  0x45   :  { %205 = vperm.xlu2 %323, %v39_v19   ;;  %200 = vperm.xlu1 %322, %v38_v20  }
  0x4c   :  { %330 = vset.pattern.permute.xlu0 %v373_v3 }
  0x4d   :  { %326 = vset.pattern.permute.xlu2 %v374_v8  ;;  %325 = vset.pattern.permute.xlu1 %v374_v8 }
  0x4e   :  { %220 = vperm.xlu0 %330, %v42_v21   ;;  %251 = vperm.xlu2 %326, %v38_v20  }
  0x4f   :  { %247 = vperm.xlu1 %325, %v37_v11  }
  0x56   :  { %327 = vset.pattern.permute.xlu2 %v373_v3 }
  0x57   :  { %255 = vperm.xlu1 %325, %v39_v19   ;;  %210 = vperm.xlu2 %327, %v40_v18  }
  0x5c   :  { %v69_v22 = vpop.permute.xlu2 %68 }
  0x5d   :  { %v86_v60 = vmul.f32 %v81_v44, %v69_v22 }
  0x5f   :  { %328 = vset.pattern.permute.xlu1 %v373_v3  ;;  %329 = vset.pattern.permute.xlu2 %v374_v8 }
  0x60   :  { %215 = vperm.xlu1 %328, %v41_v23   ;;  %263 = vperm.xlu2 %329, %v41_v23  }
  0x64   :  { %v477_v24 = vpop.permute.xlu2 %73 }
  0x68   :  { %331 = vset.pattern.permute.xlu1 %v374_v8  ;;  %332 = vset.pattern.permute.xlu2 %v373_v3 }
  0x69   :  { %267 = vperm.xlu1 %331, %v42_v21   ;;  %293 = vperm.xlu2 %332, %v43_v26   ;;  %v87_v26 = vmul.f32 %v81_v44, %v477_v24 }
  0x6e   :  { %v95_v25 = vpop.permute.xlu2 %94 }
  0x6f   :  { %v119_v47 = vmul.f32 %v117_v45, %v95_v25 }
  0x75   :  { %v59_v27 = vpop.permute.xlu1 %58  ;;  %v49_v28 = vpop.permute.xlu0 %48 }
  0x76   :  { %v107_v29 = vpop.permute.xlu2 %106  ;;  %v82_v50 = vmul.f32 %v81_v44, %v49_v28  ;;  %v84_v63 = vmul.f32 %v81_v44, %v59_v27 }
  0x77   :  { %v122_v0 = vmul.f32 %v117_v45, %v107_v29 }
  0x79   :  { %v129_v5 = vadd.f32 %v122_v0, %v86_v60 }
  0x7d   :  { %v64_v30 = vpop.permute.xlu1 %63  ;;  %v54_v31 = vpop.permute.xlu0 %53 }
  0x7e   :  { %v483_v32 = vpop.permute.xlu2 %114  ;;  %v83_v48 = vmul.f32 %v81_v44, %v54_v31  ;;  %v85_v57 = vmul.f32 %v81_v44, %v64_v30 }
  0x80   :  { %v126_v53 = vadd.f32 %v119_v47, %v83_v48 }
  0x85   :  { %v485_v33 = vpop.permute.xlu0 %78 }
  0x86   :  { %v91_v34 = vpop.permute.xlu1 %90  ;;  %v88_v40 = vmul.f32 %v81_v44, %v485_v33 }
  0x87   :  { %v145_v35 = vpop.permute.xlu2 %144  ;;  %v118_v51 = vmul.f32 %v117_v45, %v91_v34 }
  0x89   :  { %v125_v55 = vadd.f32 %v118_v51, %v82_v50 }
  0x8d   :  { %v135_v36 = vpop.permute.xlu0 %134 }
  0x8e   :  { %v103_v37 = vpop.permute.xlu1 %102  ;;  %v167_v58 = vadd.f32 %v135_v36, %v125_v55 }
  0x8f   :  { %v155_v39 = vpop.permute.xlu2 %154  ;;  %v121_v54 = vmul.f32 %v117_v45, %v103_v37 }
  0x90   :  { %v171_v8 = vadd.f32 %v155_v39, %v129_v5  ;;  %v124_v39 = vmul.f32 %v117_v45, %v483_v32 }
  0x91   :  { %v128_v62 = vadd.f32 %v121_v54, %v85_v57 }
  0x92   :  { %v131_v24 = vadd.f32 %v124_v39, %v88_v40 }
  0x95   :  { %v490_v41 = vpop.permute.xlu0 %159 }
  0x96   :  { %v111_v42 = vpop.permute.xlu1 %110 }
  0x97   :  { %v191_v46 = vpop.permute.xlu2 %190  ;;  %v123_v21 = vmul.f32 %v117_v45, %v111_v42 }
  0x99   :  { %v130_v31 = vadd.f32 %v123_v21, %v87_v26 }
  0x9b   :  { %v172_v38 = vadd.f32 %v490_v41, %v130_v31 }
  0x9d   :  { %v196_v49 = vpop.permute.xlu0 %195 }
  0x9f   :  { %v140_v52 = vpop.permute.xlu1 %139  ;;  %v206_v59 = vpop.permute.xlu2 %205 }
  0xa0   :  { %v168_v56 = vadd.f32 %v140_v52, %v126_v53 }
  0xa2   :  { %333 = vtanh.f32 %v168_v56 }
  0xa3   :  { %335 = vtanh.f32 %v167_v58 }
  0xa6   :  { %v99_v61 = vpop.permute.xlu0 %98 }
  0xa7   :  { %v120_v1 = vmul.f32 %v117_v45, %v99_v61  ;;  %v150_v2 = vpop.permute.xlu1 %149 }
  0xa8   :  { %v170_v3 = vadd.f32 %v150_v2, %v128_v62  ;;  %v334_v7 = vpop.eup %333  ;;  %v252_v10 = vpop.permute.xlu2 %251 }
  0xa9   :  { %v127_v4 = vadd.f32 %v120_v1, %v84_v63  ;;  %v336_v9 = vpop.eup %335  ;;  %v182_v12 = vsub.f32 %v168_v56, %v334_v7 }
  0xaa   :  { %337 = vtanh.f32 %v170_v3  ;;  %v181_v14 = vsub.f32 %v167_v58, %v336_v9 }
  0xab   :  { %v169_v6 = vadd.f32 %v145_v35, %v127_v4  ;;  %v224_v16 = vmul.f32 %v196_v49, %v182_v12 }
  0xac   :  { %v223_v17 = vmul.f32 %v191_v46, %v181_v14 }
  0xad   :  { %339 = vtanh.f32 %v169_v6 }
  0xae   :  { %341 = vtanh.f32 %v171_v8  ;;  %v230_v25 = vadd.f32 %v224_v16, %v223_v17  ;;  %v244_v36 = vpop.permute.xlu0 %243 }
  0xaf   :  { %v165_v11 = vpop.permute.xlu1 %164  ;;  %343 = vtanh.f32 %v172_v38  ;;  %v270_v46 = vmul.f32 %v244_v36, %v181_v14 }
  0xb0   :  { %v338_v13 = vpop.eup %337  ;;  %v173_v47 = vadd.f32 %v165_v11, %v131_v24 }
  0xb1   :  { %v184_v19 = vsub.f32 %v170_v3, %v338_v13  ;;  %v211_v27 = vpop.permute.xlu2 %210 }
  0xb2   :  { %345 = vtanh.f32 %v173_v47 }
  0xb3   :  { %v340_v15 = vpop.eup %339  ;;  %v226_v30 = vmul.f32 %v206_v59, %v184_v19 }
  0xb4   :  { %v183_v18 = vsub.f32 %v169_v6, %v340_v15  ;;  %v342_v20 = vpop.eup %341 }
  0xb5   :  { %v185_v28 = vsub.f32 %v171_v8, %v342_v20  ;;  %v344_v51 = vpop.eup %343 }
  0xb6   :  { %v272_v49 = vmul.f32 %v252_v10, %v183_v18  ;;  %v260_v50 = vpop.permute.xlu0 %259  ;;  %v186_v56 = vsub.f32 %v172_v38, %v344_v51 }
  0xb7   :  { %v201_v22 = vpop.permute.xlu1 %200  ;;  %v227_v34 = vmul.f32 %v211_v27, %v185_v28  ;;  %v274_v41 = vmul.f32 %v260_v50, %v185_v28 }
  0xb8   :  { %v225_v23 = vmul.f32 %v201_v22, %v183_v18  ;;  %v346_v44 = vpop.eup %345 }
  0xb9   :  { %v187_v60 = vsub.f32 %v173_v47, %v346_v44 }
  0xba   :  { %v231_v29 = vadd.f32 %v230_v25, %v225_v23  ;;  %v264_v55 = vpop.permute.xlu2 %263 }
  0xbb   :  { %v275_v45 = vmul.f32 %v264_v55, %v186_v56 }
  0xbc   :  { %v232_v35 = vadd.f32 %v231_v29, %v226_v30 }
  0xbe   :  { %v233_v37 = vadd.f32 %v232_v35, %v227_v34 }
  0xc0   :  { %v221_v58 = vpop.permute.xlu0 %220 }
  0xc1   :  { %v248_v42 = vpop.permute.xlu1 %247  ;;  %v229_v62 = vmul.f32 %v221_v58, %v187_v60 }
  0xc2   :  { %v271_v43 = vmul.f32 %v248_v42, %v182_v12 }
  0xc3   :  { %v294_v14 = vpop.permute.xlu2 %293 }
  0xc4   :  { %v277_v48 = vadd.f32 %v271_v43, %v270_v46 }
  0xc6   :  { %v278_v54 = vadd.f32 %v277_v48, %v272_v49 }
  0xc9   :  { %v256_v52 = vpop.permute.xlu1 %255 }
  0xca   :  { %v273_v53 = vmul.f32 %v256_v52, %v184_v19 }
  0xcc   :  { %v279_v32 = vadd.f32 %v278_v54, %v273_v53 }
  0xce   :  { %v280_v33 = vadd.f32 %v279_v32, %v274_v41 }
  0xd0   :  { %v281_v57 = vadd.f32 %v280_v33, %v275_v45 }
  0xd2   :  { %v216_v59 = vpop.permute.xlu1 %215 }
  0xd3   :  { %v228_v61 = vmul.f32 %v216_v59, %v186_v56 }
  0xd5   :  { %v234_v63 = vadd.f32 %v233_v37, %v228_v61 }
  0xd7   :  { %v235_v0 = vadd.f32 %v234_v63, %v229_v62 }
  0xd9   :  { %v236_v1 = vrot.slane %v235_v0, 4 }
  0xdb   :  { %v237_v2 = vadd.f32 %v236_v1, %v235_v0  ;;  %v268_v3 = vpop.permute.xlu1 %267 }
  0xdc   :  { %v276_v4 = vmul.f32 %v268_v3, %v187_v60 }
  0xdd   :  { %v238_v5 = vrot.slane %v237_v2, 2 }
  0xde   :  { %v282_v6 = vadd.f32 %v281_v57, %v276_v4 }
  0xdf   :  { %v239_v9 = vadd.f32 %v238_v5, %v237_v2 }
  0xe0   :  { %v283_v7 = vrot.slane %v282_v6, 4 }
  0xe1   :  { %v240_v12 = vrot.slane %v239_v9, 1 }
  0xe2   :  { %v284_v8 = vadd.f32 %v283_v7, %v282_v6 }
  0xe3   :  { %v241_v15 = vadd.f32 %v240_v12, %v239_v9 }
  0xe4   :  { %v285_v10 = vrot.slane %v284_v8, 2 }
  0xe6   :  { %v286_v11 = vadd.f32 %v285_v10, %v284_v8 }
  0xe8   :  { %v287_v13 = vrot.slane %v286_v11, 1 }
  0xea   :  { %v288_v16 = vadd.f32 %v287_v13, %v286_v11 }
  0xec   :  { %v290_v17 = vsel %vm289_vm0, %v241_v15, %v288_v16 }
  0xed   :  { %v296_v18 = vadd.f32 %v294_v14, %v290_v17 }
  0xef   :  { %297 = vst [vmem:[#allocation2] sm:$0x3] %v296_v18 }
  0xf0   :  { %308 = dma.vmem_to_hbm [thread:$0]  %s304_s4, 32, %s306_s12, [#allocation3]  }
  0xf1   :  { %371 = dma.done.wait [#allocation3], 32  }
  0xf2   :  { %372 = vsyncadd [#allocation3], 4294967264 }
  0xf3   :  { %313 = vsyncpa [#allocation3], 1 }

</bundles_post_ra>
